<compile_context>
chip_gen: v6e
topology: v6e:2x2x1
jax: 0.10.0
libtpu: 0.0.40
codegen_flags: <defaults>
</compile_context>

<pallas_src>
import functools

import jax
import jax.numpy as jnp
from jax.experimental import pallas as pl
from jax.experimental.pallas import tpu as pltpu

_LANE = 128
_MIN_SUBLANE = {4: 8, 2: 16, 1: 32}   # itemsize -> minimum sublane tile


def _round_up(x, m):
    return (x + m - 1) // m * m


def _min_sublane(*dtypes):
    return max(_MIN_SUBLANE.get(jnp.dtype(d).itemsize, 8) for d in dtypes)


def _vmem_limit_default():
    """min(3/4 of physical VMEM, 96 MiB); conservative v7x-sized fallback."""
    cap = 64 * 1024 * 1024
    try:
        info = pltpu.get_tpu_info()
        cap = int(getattr(info, "vmem_capacity_bytes", cap))
    except Exception:
        pass
    return min(cap * 3 // 4, 96 * 1024 * 1024)


# ----------------------------------------------------------------------------
# Kernels
# ----------------------------------------------------------------------------
def _sae_kernel_fused(x_ref, w1_ref, b1_ref, w2_ref, b2_ref, h_ref, y_ref, *,
                      precision):
    """Full hidden dim resident in VMEM: grid = (batch_tiles,)."""
    h_f32 = jnp.dot(x_ref[...], w1_ref[...],
                    preferred_element_type=jnp.float32, precision=precision)
    h_f32 = jnp.maximum(h_f32 + b1_ref[...], 0.0)          # bias/ReLU in f32
    h = h_f32.astype(h_ref.dtype)
    h_ref[...] = h                                          # store codes once
    h_mm = h if h_ref.dtype == w2_ref.dtype else h_f32.astype(w2_ref.dtype)
    y = jnp.dot(h_mm, w2_ref[...],
                preferred_element_type=jnp.float32, precision=precision)
    y_ref[...] = (y + b2_ref[...]).astype(y_ref.dtype)


def _sae_kernel_ktiled(x_ref, w1_ref, b1_ref, w2_ref, b2_ref, h_ref, y_ref,
                       *scratch, precision, acc_in_out):
    """Hidden dim tiled: grid = (batch_tiles, hidden_tiles); axis 1 (last) is
    the reduction axis.  fc2 partials accumulate in f32 either directly in the
    resident y output block (f32 outputs) or in a VMEM scratch."""
    acc_ref = y_ref if acc_in_out else scratch[0]
    k = pl.program_id(1)

    @pl.when(k == 0)
    def _():
        acc_ref[...] = jnp.zeros_like(acc_ref)

    h_f32 = jnp.dot(x_ref[...], w1_ref[...],
                    preferred_element_type=jnp.float32, precision=precision)
    h_f32 = jnp.maximum(h_f32 + b1_ref[...], 0.0)
    h = h_f32.astype(h_ref.dtype)
    h_ref[...] = h
    h_mm = h if h_ref.dtype == w2_ref.dtype else h_f32.astype(w2_ref.dtype)
    acc_ref[...] += jnp.dot(h_mm, w2_ref[...],
                            preferred_element_type=jnp.float32,
                            precision=precision)

    @pl.when(k == pl.num_programs(1) - 1)
    def _():
        y_ref[...] = (acc_ref[...].astype(jnp.float32) + b2_ref[...]
                      ).astype(y_ref.dtype)


# ----------------------------------------------------------------------------
# Parameter prep (one-time) and forward wrapper (hot path)
# ----------------------------------------------------------------------------
def prepare_params(w1, b1, w2, b2, stream_dtype=jnp.bfloat16):
    """One-time parameter prep (call at init, NOT per forward): pads feature
    dims to lane multiples (128) and casts the weight matrices to the MXU
    stream dtype.  Biases stay f32 (bias add + ReLU run in f32).  Zero b1
    padding + relu(0)==0 guarantee padded hidden columns don't affect fc2."""
    in_dim, hidden_dim = w1.shape
    hd2, out_dim = w2.shape
    assert hd2 == hidden_dim
    in_p = _round_up(in_dim, _LANE)
    hid_p = _round_up(hidden_dim, _LANE)
    out_p = _round_up(out_dim, _LANE)
    w1p = jnp.pad(w1, ((0, in_p - in_dim),
                       (0, hid_p - hidden_dim))).astype(stream_dtype)
    b1p = jnp.pad(jnp.asarray(b1, jnp.float32).reshape(1, -1),
                  ((0, 0), (0, hid_p - hidden_dim)))
    w2p = jnp.pad(w2, ((0, hid_p - hidden_dim),
                       (0, out_p - out_dim))).astype(stream_dtype)
    b2p = jnp.pad(jnp.asarray(b2, jnp.float32).reshape(1, -1),
                  ((0, 0), (0, out_p - out_dim)))
    return (w1p, b1p, w2p, b2p), (in_dim, hidden_dim, out_dim)


@functools.partial(
    jax.jit,
    static_argnames=("hidden_dim", "out_dim", "block_m", "block_h",
                     "h_dtype", "out_dtype", "precision", "vmem_limit_bytes"))
def sparse_autoencoder_fwd(x, w1, b1, w2, b2, *, hidden_dim=None, out_dim=None,
                           block_m=None, block_h=None, h_dtype=None,
                           out_dtype=None, precision=None,
                           vmem_limit_bytes=None):
    """Pallas forward.  x: [B, in_dim] (any dtype; cast to w1.dtype).
    w1/b1/w2/b2 must come from prepare_params() (pre-padded, stream dtype).
    Returns (h: [B, hidden_dim] in h_dtype (default: stream dtype),
             y: [B, out_dim]   in out_dtype (default: x.dtype))."""
    B, in_dim = x.shape
    in_p, hid_p = w1.shape
    hid_p2, out_p = w2.shape
    if not (in_p % _LANE == 0 and hid_p % _LANE == 0 and out_p % _LANE == 0
            and hid_p == hid_p2 and b1.shape == (1, hid_p)
            and b2.shape == (1, out_p) and in_dim <= in_p):
        raise ValueError("Pass parameters through prepare_params() first "
                         "(128-aligned, pre-padded, stream-dtype weights).")

    hidden_dim = hid_p if hidden_dim is None else hidden_dim
    out_dim = out_p if out_dim is None else out_dim
    stream_dtype = jnp.dtype(w1.dtype)
    h_dtype = jnp.dtype(stream_dtype if h_dtype is None else h_dtype)
    out_dtype = jnp.dtype(x.dtype if out_dtype is None else out_dtype)
    if vmem_limit_bytes is None:
        vmem_limit_bytes = _vmem_limit_default()

    # --- batch tiling ("parallel"; keep >=2 tiles on v7x to use both TCs) ---
    sublane = _min_sublane(stream_dtype, h_dtype, out_dtype)
    bm = 512 if block_m is None else block_m
    bm = _round_up(min(bm, _round_up(B, sublane)), sublane)
    b_p = _round_up(B, bm)
    n_i = b_p // bm

    # --- hidden tiling: full hidden if the double-buffered tiles fit VMEM ---
    isw = stream_dtype.itemsize
    ish = h_dtype.itemsize
    isy = out_dtype.itemsize
    fit_budget = int(vmem_limit_bytes * 0.85)

    def tile_bytes(bh_):
        nk_ = hid_p // bh_
        b = 2 * bm * in_p * isw                       # x tile (double-buffer)
        b += 2 * (in_p * bh_ + bh_ * out_p) * isw     # w1 / w2 tiles
        b += 2 * (bh_ + out_p) * 4                    # b1 / b2 (f32)
        b += 2 * bm * bh_ * ish                       # h tile
        b += 2 * bm * out_p * isy                     # y tile
        if nk_ > 1 and out_dtype != jnp.float32:
            b += bm * out_p * 4                       # f32 accumulator scratch
        return b

    if block_h is not None:
        bh = int(block_h)
        if bh % _LANE != 0 or hid_p % bh != 0:
            raise ValueError("block_h must be a multiple of 128 that divides "
                             "the padded hidden dim")
    else:
        bh = _LANE                                    # always-fits fallback
        for cand in range(hid_p, _LANE - 1, -_LANE):
            if hid_p % cand == 0 and tile_bytes(cand) <= fit_budget:
                bh = cand
                break
    n_k = hid_p // bh

    # --- hot path only pads/casts x (never the weights) ---------------------
    xp = x if x.dtype == stream_dtype else x.astype(stream_dtype)
    if (b_p, in_p) != xp.shape:
        xp = jnp.pad(xp, ((0, b_p - B), (0, in_p - in_dim)))

    # --- cost estimate with true HBM traffic (weights re-streamed n_i x) ----
    flops = 2 * b_p * (in_p * hid_p + hid_p * out_p)
    bytes_accessed = int(
        b_p * in_p * isw                                    # x read
        + n_i * (in_p * hid_p + hid_p * out_p) * isw        # weight streams
        + n_i * hid_p * 4 + out_p * 4                       # biases
        + b_p * hid_p * ish + b_p * out_p * isy)            # h / y writes
    cost = pl.CostEstimate(flops=flops, transcendentals=0,
                           bytes_accessed=bytes_accessed)

    out_shape = (jax.ShapeDtypeStruct((b_p, hid_p), h_dtype),
                 jax.ShapeDtypeStruct((b_p, out_p), out_dtype))

    if n_k == 1:
        # Fused single pass: weights grid-invariant, no reduction, no scratch.
        kernel = functools.partial(_sae_kernel_fused, precision=precision)
        grid = (n_i,)
        in_specs = [
            pl.BlockSpec((bm, in_p), lambda i: (i, 0)),
            pl.BlockSpec((in_p, hid_p), lambda i: (0, 0)),
            pl.BlockSpec((1, hid_p), lambda i: (0, 0)),
            pl.BlockSpec((hid_p, out_p), lambda i: (0, 0)),
            pl.BlockSpec((1, out_p), lambda i: (0, 0)),
        ]
        out_specs = [
            pl.BlockSpec((bm, hid_p), lambda i: (i, 0)),
            pl.BlockSpec((bm, out_p), lambda i: (i, 0)),
        ]
        scratch_shapes = []
        dim_sem = ("parallel",)
    else:
        acc_in_out = (out_dtype == jnp.float32)
        kernel = functools.partial(_sae_kernel_ktiled, precision=precision,
                                   acc_in_out=acc_in_out)
        grid = (n_i, n_k)
        in_specs = [
            pl.BlockSpec((bm, in_p), lambda i, k: (i, 0)),   # x: fixed over k
            pl.BlockSpec((in_p, bh), lambda i, k: (0, k)),   # w1 column tile
            pl.BlockSpec((1, bh), lambda i, k: (0, k)),      # b1 tile
            pl.BlockSpec((bh, out_p), lambda i, k: (k, 0)),  # w2 row tile
            pl.BlockSpec((1, out_p), lambda i, k: (0, 0)),   # b2 (invariant)
        ]
        out_specs = [
            pl.BlockSpec((bm, bh), lambda i, k: (i, k)),     # h tile
            pl.BlockSpec((bm, out_p), lambda i, k: (i, 0)),  # y: resident
        ]
        scratch_shapes = ([] if acc_in_out
                          else [pltpu.VMEM((bm, out_p), jnp.float32)])
        dim_sem = ("parallel", "arbitrary")

    h_p, y_p = pl.pallas_call(
        kernel,
        out_shape=out_shape,
        grid_spec=pltpu.PrefetchScalarGridSpec(
            num_scalar_prefetch=0,
            grid=grid,
            in_specs=in_specs,
            out_specs=out_specs,
            scratch_shapes=scratch_shapes),
        compiler_params=pltpu.CompilerParams(
            dimension_semantics=dim_sem,
            vmem_limit_bytes=int(vmem_limit_bytes)),
        cost_estimate=cost,
    )(xp, w1, b1, w2, b2)

    return h_p[:B, :hidden_dim], y_p[:B, :out_dim]


def init_params(key, in_dim, hidden_dim, out_dim, dtype=jnp.float32):
    """nn.Linear-style init (uniform +/- 1/sqrt(fan_in)); weights stored
    transposed relative to PyTorch ([out, in] -> [in, out])."""
    k1, k2, k3, k4 = jax.random.split(key, 4)
    bound1 = 1.0 / (in_dim ** 0.5)
    bound2 = 1.0 / (hidden_dim ** 0.5)
    w1 = jax.random.uniform(k1, (in_dim, hidden_dim), dtype, -bound1, bound1)
    b1 = jax.random.uniform(k2, (1, hidden_dim), dtype, -bound1, bound1)
    w2 = jax.random.uniform(k3, (hidden_dim, out_dim), dtype, -bound2, bound2)
    b2 = jax.random.uniform(k4, (1, out_dim), dtype, -bound2, bound2)
    return w1, b1, w2, b2


if __name__ == "__main__":
    # Small, deliberately non-128-aligned shapes.
    B, IN_DIM, HIDDEN_DIM, OUT_DIM = 20, 48, 192, 40

    key = jax.random.PRNGKey(0)
    kx, kp = jax.random.split(key)
    x = jax.random.normal(kx, (B, IN_DIM), jnp.float32)
    w1, b1, w2, b2 = init_params(kp, IN_DIM, HIDDEN_DIM, OUT_DIM)

    # Pure-JAX reference (high-precision matmuls).
    hp = jax.lax.Precision.HIGHEST
    h_ref = jnp.maximum(jnp.dot(x, w1, precision=hp) + b1, 0.0)
    y_ref = jnp.dot(h_ref, w2, precision=hp) + b2

    # Recommended path: bf16 weight streaming (params padded + cast ONCE),
    # f32 accumulation, bf16 codes (h), f32 reconstruction (y).  Small shapes
    # mean the full hidden dim fits VMEM -> fused single-pass kernel.
    (pw1, pb1, pw2, pb2), _ = prepare_params(w1, b1, w2, b2,
                                             stream_dtype=jnp.bfloat16)
    h16, y16 = sparse_autoencoder_fwd(
        x, pw1, pb1, pw2, pb2, hidden_dim=HIDDEN_DIM, out_dim=OUT_DIM,
        out_dtype=jnp.float32)
    jax.block_until_ready((h16, y16))
    assert h16.shape == (B, HIDDEN_DIM) and h16.dtype == jnp.bfloat16
    assert y16.shape == (B, OUT_DIM) and y16.dtype == jnp.float32
    assert jnp.allclose(h16.astype(jnp.float32), h_ref, atol=3e-2, rtol=3e-2)
    assert jnp.allclose(y16, y_ref, atol=3e-2, rtol=3e-2)

    # f32 streaming path with forced small tiles: exercises batch tiling
    # (3 tiles), the hidden reduction axis (2 k-steps) and direct-into-y
    # f32 accumulation (no scratch).
    (fw1, fb1, fw2, fb2), _ = prepare_params(w1, b1, w2, b2,
                                             stream_dtype=jnp.float32)
    h32, y32 = sparse_autoencoder_fwd(
        x, fw1, fb1, fw2, fb2, hidden_dim=HIDDEN_DIM, out_dim=OUT_DIM,
        block_m=8, block_h=128)
    jax.block_until_ready((h32, y32))
    assert h32.shape == (B, HIDDEN_DIM) and y32.shape == (B, OUT_DIM)
    # Numeric contract: default-precision f32 MXU path (multi-pass bf16).
    assert jnp.allclose(h32, h_ref, atol=5e-3, rtol=5e-3)
    assert jnp.allclose(y32, y_ref, atol=5e-3, rtol=5e-3)

    print("KERNEL_OK")
</pallas_src>

<mosaic_0001>
module attributes {stable_mosaic.version = 11 : i64} {
  func.func @_sae_kernel_fused(%arg0: i32, %arg1: memref<32x128xbf16, #tpu.memory_space<vmem>>, %arg2: memref<128x256xbf16, #tpu.memory_space<vmem>>, %arg3: memref<1x256xf32, #tpu.memory_space<vmem>>, %arg4: memref<256x128xbf16, #tpu.memory_space<vmem>>, %arg5: memref<1x128xf32, #tpu.memory_space<vmem>>, %arg6: memref<32x256xbf16, #tpu.memory_space<vmem>>, %arg7: memref<32x128xf32, #tpu.memory_space<vmem>>) attributes {dimension_semantics = [#tpu.dimension_semantics<parallel>], iteration_bounds = array<i64: 1>, scalar_prefetch = 0 : i64, scratch_operands = 0 : i64, tpu.core_type = #tpu.core_type<tc>, window_params = [{transform_indices = @transform_0, window_bounds = array<i64: 32, 128>}, {pipeline_mode = #tpu.pipeline_mode<synchronous>, transform_indices = @transform_1, window_bounds = array<i64: 128, 256>}, {pipeline_mode = #tpu.pipeline_mode<synchronous>, transform_indices = @transform_2, window_bounds = array<i64: 1, 256>}, {pipeline_mode = #tpu.pipeline_mode<synchronous>, transform_indices = @transform_3, window_bounds = array<i64: 256, 128>}, {pipeline_mode = #tpu.pipeline_mode<synchronous>, transform_indices = @transform_4, window_bounds = array<i64: 1, 128>}, {transform_indices = @transform_5, window_bounds = array<i64: 32, 256>}, {transform_indices = @transform_6, window_bounds = array<i64: 32, 128>}]} {
    %c0 = arith.constant 0 : index
    %c0_0 = arith.constant 0 : index
    %0 = vector.load %arg1[%c0, %c0_0] : memref<32x128xbf16, #tpu.memory_space<vmem>>, vector<32x128xbf16>
    %c0_1 = arith.constant 0 : index
    %c0_2 = arith.constant 0 : index
    %1 = vector.load %arg2[%c0_1, %c0_2] : memref<128x256xbf16, #tpu.memory_space<vmem>>, vector<128x256xbf16>
    %cst = arith.constant dense<0.000000e+00> : vector<32x256xf32>
    %2 = tpu.matmul %0, %1, %cst {dimension_numbers = #tpu.dot_dimension_numbers<[1], [0], [0], [1], [0, 0, 1, 1], [], []>} : vector<32x128xbf16>, vector<128x256xbf16>, vector<32x256xf32> -> vector<32x256xf32>
    %c0_3 = arith.constant 0 : index
    %c0_4 = arith.constant 0 : index
    %3 = vector.load %arg3[%c0_3, %c0_4] : memref<1x256xf32, #tpu.memory_space<vmem>>, vector<1x256xf32>
    %4 = vector.broadcast %3 : vector<1x256xf32> to vector<32x256xf32>
    %5 = arith.addf %2, %4 : vector<32x256xf32>
    %cst_5 = arith.constant 0.000000e+00 : f32
    %6 = vector.broadcast %cst_5 : f32 to vector<32x256xf32>
    %7 = arith.maximumf %5, %6 : vector<32x256xf32>
    %8 = arith.truncf %7 : vector<32x256xf32> to vector<32x256xbf16>
    %c0_6 = arith.constant 0 : index
    %c0_7 = arith.constant 0 : index
    %9 = vector.load %arg6[%c0_6, %c0_7] : memref<32x256xbf16, #tpu.memory_space<vmem>>, vector<32x256xbf16>
    tpu.vector_store %arg6[%c0_6, %c0_7], %8 {strides = array<i32>} : memref<32x256xbf16, #tpu.memory_space<vmem>>, vector<32x256xbf16>,
    %c0_8 = arith.constant 0 : index
    %c0_9 = arith.constant 0 : index
    %10 = vector.load %arg4[%c0_8, %c0_9] : memref<256x128xbf16, #tpu.memory_space<vmem>>, vector<256x128xbf16>
    %cst_10 = arith.constant dense<0.000000e+00> : vector<32x128xf32>
    %11 = tpu.matmul %8, %10, %cst_10 {dimension_numbers = #tpu.dot_dimension_numbers<[1], [0], [0], [1], [0, 0, 1, 1], [], []>} : vector<32x256xbf16>, vector<256x128xbf16>, vector<32x128xf32> -> vector<32x128xf32>
    %c0_11 = arith.constant 0 : index
    %c0_12 = arith.constant 0 : index
    %12 = vector.load %arg5[%c0_11, %c0_12] : memref<1x128xf32, #tpu.memory_space<vmem>>, vector<1x128xf32>
    %13 = vector.broadcast %12 : vector<1x128xf32> to vector<32x128xf32>
    %14 = arith.addf %11, %13 : vector<32x128xf32>
    %c0_13 = arith.constant 0 : index
    %c0_14 = arith.constant 0 : index
    %15 = vector.load %arg7[%c0_13, %c0_14] : memref<32x128xf32, #tpu.memory_space<vmem>>, vector<32x128xf32>
    tpu.vector_store %arg7[%c0_13, %c0_14], %14 {strides = array<i32>} : memref<32x128xf32, #tpu.memory_space<vmem>>, vector<32x128xf32>,
    return
  }
  func.func @transform_0(%arg0: i32) -> (i32, i32) {
    %c0_i32 = arith.constant 0 : i32
    %c0_i32_0 = arith.constant 0 : i32
    return %arg0, %c0_i32 : i32, i32
  }
  func.func @transform_1(%arg0: i32) -> (i32, i32) {
    %c0_i32 = arith.constant 0 : i32
    %c0_i32_0 = arith.constant 0 : i32
    %c0_i32_1 = arith.constant 0 : i32
    return %c0_i32, %c0_i32_0 : i32, i32
  }
  func.func @transform_2(%arg0: i32) -> (i32, i32) {
    %c0_i32 = arith.constant 0 : i32
    %c0_i32_0 = arith.constant 0 : i32
    %c0_i32_1 = arith.constant 0 : i32
    return %c0_i32, %c0_i32_0 : i32, i32
  }
  func.func @transform_3(%arg0: i32) -> (i32, i32) {
    %c0_i32 = arith.constant 0 : i32
    %c0_i32_0 = arith.constant 0 : i32
    %c0_i32_1 = arith.constant 0 : i32
    return %c0_i32, %c0_i32_0 : i32, i32
  }
  func.func @transform_4(%arg0: i32) -> (i32, i32) {
    %c0_i32 = arith.constant 0 : i32
    %c0_i32_0 = arith.constant 0 : i32
    %c0_i32_1 = arith.constant 0 : i32
    return %c0_i32, %c0_i32_0 : i32, i32
  }
  func.func @transform_5(%arg0: i32) -> (i32, i32) {
    %c0_i32 = arith.constant 0 : i32
    %c0_i32_0 = arith.constant 0 : i32
    return %arg0, %c0_i32 : i32, i32
  }
  func.func @transform_6(%arg0: i32) -> (i32, i32) {
    %c0_i32 = arith.constant 0 : i32
    %c0_i32_0 = arith.constant 0 : i32
    return %arg0, %c0_i32 : i32, i32
  }
}

</mosaic_0001>

<bundles_post_ra>
// kernel: sparse_autoencoder_fwd.1
= control target key start
LH: loop header
LB: loop body
LE: loop exit
PB: predicated region body
PF: predicated region fallthrough
CT: control target
= control target key end

     0   :  { %12 = vsyncpa [#allocation3], 0  ;;  %s710_s0 = inlined_call_operand.vmem [shape: bf16[32,128], index: 0, kind: input, shape index: {}]   ;;  %s711_s1 = inlined_call_operand.hbm [shape: bf16[128,256], index: 1, kind: input, shape index: {}]   ;;  %s712_s2 = inlined_call_operand.vmem [shape: f32[1,256], index: 2, kind: input, shape index: {}]   ;;  %s713_s3 = inlined_call_operand.hbm [shape: bf16[256,128], index: 3, kind: input, shape index: {}]   ;;  %s714_s4 = inlined_call_operand.vmem [shape: f32[1,128], index: 4, kind: input, shape index: {}]   ;;  %s715_s5 = inlined_call_operand.vmem [shape: bf16[32,256], index: 5, kind: output, shape index: {0}]   ;;  %s716_s6 = inlined_call_operand.vmem [shape: f32[32,128], index: 6, kind: output, shape index: {1}]  }
   0x1   :  { %13 = vsyncpa [#allocation5], 0  ;;  %s626_s21 = smov [#allocation2]  }
   0x2   :  { %s21_s22 = sshll.u32 %s626_s21, 4  ;;  %s22_s22 = int_to_ptr.vmem [resolvable:$true] %s21_s22 }
   0x3   :  { %s590_s23 = scalar_lea.vmem %s22_s22, 2048  ;;  %p595_p1 = scmp.lt.s32.totalorder %s22_s22, %s22_s22 }
   0x4   :  { %p591_p0 = scmp.ne.s32.totalorder %s22_s22, %s590_s23  ;;  %p596_p2 = scmp.lt.s32.totalorder %s590_s23, %s590_s23 }
   0x6   :  { %p597_p3 = por %p596_p2, %p595_p1 }
   0x8   :  { %p598_p4 = pnand %p597_p3, %p591_p0 }
   0xa   :  { %601 = shalt.err (!%p598_p4)
}
   0xb   :  { %s627_s24 = smov 128   ;;  %s628_s25 = smov 8  }
   0xc   :  { %27 = dma.hbm_to_vmem [thread:$0]  %s711_s1, 2048, %s22_s22, [#allocation3], %s627_s24, %s627_s24, %s628_s25  }
   0xd   :  { %s629_s28 = smov [#allocation4]  }
   0xe   :  { %s35_s29 = sshll.u32 %s629_s28, 4  ;;  %s36_s29 = int_to_ptr.vmem [resolvable:$true] %s35_s29 }
   0xf   :  { %s610_s30 = scalar_lea.vmem %s36_s29, 2048  ;;  %p615_p6 = scmp.lt.s32.totalorder %s36_s29, %s36_s29 }
  0x10   :  { %p611_p5 = scmp.ne.s32.totalorder %s36_s29, %s610_s30  ;;  %p616_p7 = scmp.lt.s32.totalorder %s610_s30, %s610_s30 }
  0x12   :  { %p617_p8 = por %p616_p7, %p615_p6 }
  0x14   :  { %p618_p9 = pnand %p617_p8, %p611_p5 }
  0x16   :  { %621 = shalt.err (!%p618_p9)
}
  0x17   :  { %s630_s7 = smov 64   ;;  %s631_s8 = smov 4  }
  0x18   :  { %41 = dma.hbm_to_vmem [thread:$0]  %s713_s3, 2048, %s36_s29, [#allocation5], %s630_s7, %s630_s7, %s631_s8  }
  0x19   :  { %622 = dma.done.wait [#allocation3], 2048  }
  0x1a   :  { %623 = vsyncadd [#allocation3], 4294965248 }
  0x1b   :  { %624 = dma.done.wait [#allocation5], 2048  }
  0x1c   :  { %625 = vsyncadd [#allocation5], 4294965248  ;;  %v632_v0 = vmov 0   ;;  %v540_v1 = vld [vmem:[#allocation2 + $0x74] ss:$8 sps:$4 sm:$0xff]   ;;  %v570_v16 = vld [vmem:[#allocation4 + $0x68] sm:$0xff]   ;;  %v73_v35 = vlaneseq }
  0x1d   :  { %207 = vmatprep.mubr.bf16.mxu0 %v632_v0  ;;  %v542_v2 = vld [vmem:[#allocation2 + $0x70] ss:$8 sps:$4 sm:$0xff]   ;;  %175 = vmatprep.subr.bf16.mxu0 %v540_v1  ;;  %v543_v3 = vld [vmem:[#allocation2 + $0x64] ss:$8 sps:$4 sm:$0xff]   ;;  %v545_v4 = vld [vmem:[#allocation2 + $0x60] ss:$8 sps:$4 sm:$0xff]  }
  0x1e   :  { %176 = vmatpush1.bf16.msra.mxu0 %v542_v2  ;;  %v546_v5 = vld [vmem:[#allocation2 + $0x54] ss:$8 sps:$4 sm:$0xff]   ;;  %v548_v6 = vld [vmem:[#allocation2 + $0x50] ss:$8 sps:$4 sm:$0xff]   ;;  %v549_v7 = vld [vmem:[#allocation2 + $0x44] ss:$8 sps:$4 sm:$0xff]  }
  0x1f   :  { %177 = vmatprep.subr.bf16.mxu0 %v543_v3  ;;  %v551_v8 = vld [vmem:[#allocation2 + $0x40] ss:$8 sps:$4 sm:$0xff]   ;;  %v552_v9 = vld [vmem:[#allocation2 + $0x34] ss:$8 sps:$4 sm:$0xff]   ;;  %v554_v10 = vld [vmem:[#allocation2 + $0x30] ss:$8 sps:$4 sm:$0xff]  }
  0x20   :  { %v566_v11 = vld [vmem:[#allocation4 + $0x78] sm:$0xff]   ;;  %v555_v12 = vld [vmem:[#allocation2 + $0x24] ss:$8 sps:$4 sm:$0xff]   ;;  %v568_v14 = vld [vmem:[#allocation4 + $0x70] sm:$0xff]   ;;  %v74_v36 = vshrl.u32 %v73_v35, 7 }
  0x21   :  { %v567_v13 = vld [vmem:[#allocation4 + $0x38] sm:$0xff]   ;;  %505 = vmatprep.subr.bf16.mxu1 %v566_v11  ;;  %v569_v15 = vld [vmem:[#allocation4 + $0x30] sm:$0xff]   ;;  %v557_v17 = vld [vmem:[#allocation2 + $0x20] ss:$8 sps:$4 sm:$0xff]  }
  0x22   :  { %178 = vmatpush1.bf16.msra.mxu0 %v545_v4  ;;  %506 = vmatpush3.bf16.msra.mxu1 %v567_v13  ;;  %v558_v18 = vld [vmem:[#allocation2 + $0x14] ss:$8 sps:$4 sm:$0xff]   ;;  %v571_v19 = vld [vmem:[#allocation4 + $0x28] sm:$0xff]   ;;  %v560_v20 = vld [vmem:[#allocation2 + $0x10] ss:$8 sps:$4 sm:$0xff]   ;;  %v75_v37 = vsub.s32 0, %v74_v36 }
  0x23   :  { %179 = vmatprep.subr.bf16.mxu0 %v546_v5  ;;  %507 = vmatprep.subr.bf16.mxu1 %v568_v14  ;;  %v572_v21 = vld [vmem:[#allocation4 + $0x60] sm:$0xff]   ;;  %v574_v24 = vld [vmem:[#allocation4 + $0x58] sm:$0xff]   ;;  %v565_v28 = vld [vmem:[%s710_s0 + $0x8] sm:$0xff]   ;;  %v79_v39 = vsub.s32 1, %v74_v36 }
  0x24   :  { %v561_v22 = vld [vmem:[#allocation2 + $0x4] ss:$8 sps:$4 sm:$0xff]   ;;  %v563_v25 = vld [vmem:[#allocation2] ss:$8 sps:$4 sm:$0xff]   ;;  %v575_v26 = vld [vmem:[#allocation4 + $0x18] sm:$0xff]  }
  0x25   :  { %v573_v23 = vld [vmem:[#allocation4 + $0x20] sm:$0xff]   ;;  %v576_v29 = vld [vmem:[#allocation4 + $0x50] sm:$0xff]   ;;  %v578_v31 = vld [vmem:[#allocation4 + $0x48] sm:$0xff]  }
  0x26   :  { %180 = vmatpush1.bf16.msra.mxu0 %v548_v6  ;;  %508 = vmatpush3.bf16.msra.mxu1 %v569_v15  ;;  %v564_v27 = vld [vmem:[%s710_s0] sm:$0xff]   ;;  %v577_v30 = vld [vmem:[#allocation4 + $0x10] sm:$0xff]   ;;  %v579_v32 = vld [vmem:[#allocation4 + $0x8] sm:$0xff]  }
  0x27   :  { %181 = vmatprep.subr.bf16.mxu0 %v549_v7  ;;  %509 = vmatprep.subr.bf16.mxu1 %v570_v16  ;;  %v580_v33 = vld [vmem:[#allocation4 + $0x40] sm:$0xff]  }
  0x28   :  { %v581_v34 = vld [vmem:[#allocation4] sm:$0xff]  }
  0x29   :  { %v71_v38 = vld [vmem:[%s712_s2] sm:$0x3] }
  0x2a   :  { %182 = vmatpush1.bf16.msra.mxu0 %v551_v8  ;;  %510 = vmatpush3.bf16.msra.mxu1 %v571_v19  ;;  %v76_v40 = vrot.slane %v71_v38, %v75_v37  ;;  %v80_v41 = vrot.slane %v71_v38, %v79_v39  ;;  %v484_v11 = vld [vmem:[%s714_s4] ss:$0 sm:$0xff] }
  0x2b   :  { %183 = vmatprep.subr.bf16.mxu0 %v552_v9  ;;  %511 = vmatprep.subr.bf16.mxu1 %v572_v21 }
  0x2e   :  { %184 = vmatpush1.bf16.msra.mxu0 %v554_v10  ;;  %512 = vmatpush3.bf16.msra.mxu1 %v573_v23 }
  0x2f   :  { %185 = vmatprep.subr.bf16.mxu0 %v555_v12  ;;  %513 = vmatprep.subr.bf16.mxu1 %v574_v24 }
  0x32   :  { %186 = vmatpush1.bf16.msra.mxu0 %v557_v17  ;;  %514 = vmatpush3.bf16.msra.mxu1 %v575_v26 }
  0x33   :  { %187 = vmatprep.subr.bf16.mxu0 %v558_v18  ;;  %515 = vmatprep.subr.bf16.mxu1 %v576_v29 }
  0x36   :  { %188 = vmatpush1.bf16.msra.mxu0 %v560_v20  ;;  %516 = vmatpush3.bf16.msra.mxu1 %v577_v30 }
  0x37   :  { %189 = vmatprep.subr.bf16.mxu0 %v561_v22  ;;  %517 = vmatprep.subr.bf16.mxu1 %v578_v31 }
  0x3a   :  { %190 = vmatpush1.bf16.msra.mxu0 %v563_v25  ;;  %518 = vmatpush3.bf16.msra.mxu1 %v579_v32 }
  0x3b   :  { %519 = vmatprep.subr.bf16.mxu1 %v580_v33 }
  0x3d   :  { %208 = vmatmul.mubr.bf16.vlgmr.msra.gmra.mxu0 %v564_v27 }
  0x3e   :  { %217 = vmatprep.mubr.bf16.mxu0 %v632_v0  ;;  %520 = vmatpush3.bf16.msra.mxu1 %v581_v34 }
  0x45   :  { %218 = vmatmul.mubr.bf16.gmra.mxu0 %v565_v28 }
  0xfd   :  { %v209_v42 = vpop.f32.mrf.mxu0 }
  0xfe   :  { %v210_v43 = vadd.f32 %v209_v42, %v76_v40 }
  0xff   :  { %v211_v44 = vpop.f32.mrf.mxu0 }
 0x100   :  { %v212_v45 = vadd.f32 %v211_v44, %v80_v41  ;;  %v228_v47 = vmax.f32 %v210_v43, 0.0 }
 0x101   :  { %v213_v46 = vpop.f32.mrf.mxu0 }
 0x102   :  { %v229_v48 = vmax.f32 %v212_v45, 0.0  ;;  %v214_v49 = vadd.f32 %v213_v46, %v76_v40 }
 0x103   :  { %v215_v50 = vpop.f32.mrf.mxu0 }
 0x104   :  { %v501_v51 = vpack.c.bf16 %v229_v48, %v228_v47  ;;  %v216_v52 = vadd.f32 %v215_v50, %v80_v41  ;;  %v230_v53 = vmax.f32 %v214_v49, 0.0 }
 0x105   :  { %v219_v54 = vpop.f32.mrf.mxu0 }
 0x106   :  { %260 = vst [vmem:[%s715_s5] sm:$0xff] %v501_v51  ;;  %v231_v55 = vmax.f32 %v216_v52, 0.0  ;;  %v220_v56 = vadd.f32 %v219_v54, %v76_v40  ;;  %v236_v61 = vpack.c.bf16 %v230_v53, %v228_v47 }
 0x107   :  { %v221_v57 = vpop.f32.mrf.mxu0 }
 0x108   :  { %v502_v58 = vpack.c.bf16 %v231_v55, %v230_v53  ;;  %v222_v59 = vadd.f32 %v221_v57, %v80_v41  ;;  %v237_v60 = vpack.c.bf16 %v231_v55, %v229_v48  ;;  %v232_v63 = vmax.f32 %v220_v56, 0.0 }
 0x109   :  { %v223_v62 = vpop.f32.mrf.mxu0 }
 0x10a   :  { %261 = vst [vmem:[%s715_s5 + $0x8] sm:$0xff] %v502_v58  ;;  %v233_v0 = vmax.f32 %v222_v59, 0.0  ;;  %v224_v1 = vadd.f32 %v223_v62, %v76_v40  ;;  %431 = vmatprep.mubr.bf16.mxu1 %v237_v60 }
 0x10b   :  { %v225_v2 = vpop.f32.mrf.mxu0  ;;  %432 = vmatmul.mubr.bf16.vlgmr.msra.gmra.mxu1 %v236_v61 }
 0x10c   :  { %v503_v3 = vpack.c.bf16 %v233_v0, %v232_v63  ;;  %v226_v4 = vadd.f32 %v225_v2, %v80_v41  ;;  %v234_v5 = vmax.f32 %v224_v1, 0.0 }
 0x10e   :  { %262 = vst [vmem:[%s715_s5 + $0x10] sm:$0xff] %v503_v3  ;;  %v235_v6 = vmax.f32 %v226_v4, 0.0  ;;  %v238_v9 = vpack.c.bf16 %v234_v5, %v232_v63 }
 0x110   :  { %v239_v7 = vpack.c.bf16 %v235_v6, %v233_v0  ;;  %v504_v8 = vpack.c.bf16 %v235_v6, %v234_v5 }
 0x112   :  { %263 = vst [vmem:[%s715_s5 + $0x18] sm:$0xff] %v504_v8  ;;  %439 = vmatprep.mubr.bf16.mxu1 %v239_v7 }
 0x113   :  { %440 = vmatmul.mubr.bf16.gmra.mxu1 %v238_v9 }
 0x1cb   :  { %v521_v10 = vpop.f32.mrf.mxu1 }
 0x1cd   :  { %v522_v12 = vpop.f32.mrf.mxu1 }
 0x1ce   :  { %v523_v13 = vadd.f32 %v522_v12, %v521_v10 }
 0x1cf   :  { %v524_v14 = vpop.f32.mrf.mxu1 }
 0x1d0   :  { %v434_v15 = vadd.f32 %v523_v13, %v484_v11 }
 0x1d1   :  { %v525_v16 = vpop.f32.mrf.mxu1 }
 0x1d2   :  { %448 = vst [vmem:[%s716_s6] sm:$0xff] %v434_v15  ;;  %v526_v17 = vadd.f32 %v525_v16, %v524_v14 }
 0x1d3   :  { %v527_v18 = vpop.f32.mrf.mxu1 }
 0x1d4   :  { %v437_v19 = vadd.f32 %v526_v17, %v484_v11 }
 0x1d5   :  { %v528_v20 = vpop.f32.mrf.mxu1 }
 0x1d6   :  { %449 = vst [vmem:[%s716_s6 + $0x8] sm:$0xff] %v437_v19  ;;  %v529_v21 = vadd.f32 %v528_v20, %v527_v18 }
 0x1d7   :  { %v530_v22 = vpop.f32.mrf.mxu1 }
 0x1d8   :  { %v442_v23 = vadd.f32 %v529_v21, %v484_v11 }
 0x1d9   :  { %v531_v24 = vpop.f32.mrf.mxu1 }
 0x1da   :  { %450 = vst [vmem:[%s716_s6 + $0x10] sm:$0xff] %v442_v23  ;;  %v532_v25 = vadd.f32 %v531_v24, %v530_v22 }
 0x1dc   :  { %v445_v26 = vadd.f32 %v532_v25, %v484_v11 }
 0x1de   :  { %451 = vst [vmem:[%s716_s6 + $0x18] sm:$0xff] %v445_v26 }
 0x1df   :  { %460 = vsyncpa [#allocation3], 1 }
 0x1e0   :  { %461 = vsyncpa [#allocation5], 1 }

</bundles_post_ra>
